<compile_context>
chip_gen: v5e
topology: v5e:2x2
jax: 0.10.0
libtpu: 0.0.40
codegen_flags: <defaults>
</compile_context>

<pallas_src>
import jax
import jax.numpy as jnp
from jax import lax
from jax.experimental import pallas as pl
from jax.experimental.pallas import tpu as pltpu


NUM_QF = 2      # twin SAC critics stacked into one kernel call
NQ_PAD = 8      # critic rows padded to one f32 sublane tile (rows NUM_QF.. are zero)


def _round_up(x: int, m: int) -> int:
    return (x + m - 1) // m * m


def _cdiv(a: int, b: int) -> int:
    return (a + b - 1) // b


# ---------------------------------------------------------------------------
# Kernel: both critics fused.
#   h1 = relu(obs@W1o + act@W1a + b1)          (TB, 2H)   bf16 MXU, f32 acc
#   h2 = relu(h1 @ W2_blockdiag + b2)          (TB, 2H)   bf16 MXU, f32 acc
#   q  = W3 @ h2^T + b3                        (8,  TB)   f32, lane-dense output
# ---------------------------------------------------------------------------
def contqf_kernel(obs_ref, act_ref, w1o_ref, w1a_ref, b1_ref, w2_ref, b2_ref,
                  w3_ref, b3_ref, out_ref):
    # In-kernel bf16 cast (VPU) — avoids a separate XLA cast op + extra HBM traffic.
    obs = obs_ref[...].astype(jnp.bfloat16)
    act = act_ref[...].astype(jnp.bfloat16)

    # Layer 1 — fused "concat": two matmuls against the split W1, summed in f32.
    h1 = jnp.dot(obs, w1o_ref[...], preferred_element_type=jnp.float32)
    h1 = h1 + jnp.dot(act, w1a_ref[...], preferred_element_type=jnp.float32)
    h1 = jnp.maximum(h1 + b1_ref[...], 0.0)                      # (TB, 2H) f32

    # Layer 2 — single block-diagonal matmul covering both critics (fills the
    # 256-wide MXU on v6e/v7x; exact per-critic math since off-diag blocks are 0).
    h2 = jnp.dot(h1.astype(jnp.bfloat16), w2_ref[...],
                 preferred_element_type=jnp.float32)
    h2 = jnp.maximum(h2 + b2_ref[...], 0.0)                      # (TB, 2H) f32

    # proj — lane-dense: q = W3 @ h2^T  (NT dimension numbers, f32 MXU).
    # Result has the batch on the lane axis, so the store is an unmasked vst.
    q = lax.dot_general(w3_ref[...], h2,
                        dimension_numbers=(((1,), (1,)), ((), ())),
                        preferred_element_type=jnp.float32)      # (8, TB)
    out_ref[...] = q + b3_ref[...]                               # (8, TB) + (8, 1)


# ---------------------------------------------------------------------------
# Wrapper: flatten, choose batch tiling, launch the batch-tiled pallas_call.
# Returns q of shape (NUM_QF, B): row c is ContQf.forward of critic c.
# ---------------------------------------------------------------------------
def contqf_forward(obs, act, params, *, max_block_b: int = 2048):
    B = obs.shape[0]
    obs_f = obs.reshape(B, -1).astype(jnp.float32)
    act_f = act.reshape(B, -1).astype(jnp.float32)
    obs_dim = obs_f.shape[1]
    act_dim = act_f.shape[1]

    w1o, w1a, b1, w2, b2, w3, b3 = params
    H2 = w2.shape[0]    # NUM_QF * hidden

    # Tile policy:
    #  * B < 256: one tile (pad only to a multiple of 8 sublanes; block == full dim
    #    so the lane-multiple-of-128 rule does not apply).
    #  * B >= 256: >=2 tiles of equal size, each a multiple of 128 lanes (lane-dense
    #    output blocks) and at most max_block_b rows; >=2 steps feeds both v7x cores,
    #    while 2048-row tiles keep per-step overhead negligible on v5e/v6e.
    if B < 256:
        tb = _round_up(B, 8)
    else:
        ntiles = max(2, _cdiv(B, max_block_b))
        tb = _round_up(_cdiv(B, ntiles), 128)
    B_pad = _round_up(B, tb)
    if B_pad != B:          # pad at most one tile; skipped entirely when aligned
        pad = B_pad - B
        obs_f = jnp.pad(obs_f, ((0, pad), (0, 0)))
        act_f = jnp.pad(act_f, ((0, pad), (0, 0)))

    grid = (B_pad // tb,)
    const2d = lambda i: (0, 0)   # weights/biases: VMEM-resident, fetched once

    q = pl.pallas_call(
        contqf_kernel,
        out_shape=jax.ShapeDtypeStruct((NQ_PAD, B_pad), jnp.float32),
        grid=grid,
        in_specs=[
            pl.BlockSpec((tb, obs_dim), lambda i: (i, 0)),        # obs tile (f32)
            pl.BlockSpec((tb, act_dim), lambda i: (i, 0)),        # act tile (f32)
            pl.BlockSpec((obs_dim, H2), const2d),                 # W1_obs (bf16)
            pl.BlockSpec((act_dim, H2), const2d),                 # W1_act (bf16)
            pl.BlockSpec((1, H2), const2d),                       # b1 (f32)
            pl.BlockSpec((H2, H2), const2d),                      # W2 block-diag (bf16)
            pl.BlockSpec((1, H2), const2d),                       # b2 (f32)
            pl.BlockSpec((NQ_PAD, H2), const2d),                  # W3 rows (f32)
            pl.BlockSpec((NQ_PAD, 1), const2d),                   # b3 column (f32)
        ],
        out_specs=pl.BlockSpec((NQ_PAD, tb), lambda i: (0, i)),   # lane-dense output
        compiler_params=pltpu.CompilerParams(
            dimension_semantics=("parallel",),                    # megacore on v7x
        ),
    )(obs_f, act_f, w1o, w1a, b1, w2, b2, w3, b3)

    return q[:NUM_QF, :B]                                         # (NUM_QF, B)


# ---------------------------------------------------------------------------
# Deterministic parameter init: kaiming_normal(fan_in) weights, zero proj bias
# (layer_init); encoder biases get small random values so the bias path is
# exercised numerically.  Both critics' weights are packed for the fused kernel:
#   W1o/W1a : per-critic column blocks           -> (obs_dim, 2H), (act_dim, 2H)
#   W2      : block-diagonal                     -> (2H, 2H)
#   W3      : row c holds critic c's weights in its column block, rest zero -> (8, 2H)
# ---------------------------------------------------------------------------
def kaiming_normal(key, fan_in, fan_out):
    std = (2.0 / fan_in) ** 0.5                 # PyTorch kaiming_normal_ default
    return jax.random.normal(key, (fan_in, fan_out), dtype=jnp.float32) * std


def make_params(key, obs_dim, act_dim, hidden):
    D = obs_dim + act_dim
    H2 = NUM_QF * hidden
    keys = jax.random.split(key, 3 * NUM_QF + 2)

    w1o_cols, w1a_cols = [], []
    w2_bd = jnp.zeros((H2, H2), jnp.float32)
    w3_p = jnp.zeros((NQ_PAD, H2), jnp.float32)
    for c in range(NUM_QF):
        k1, k2, k3 = keys[3 * c:3 * c + 3]
        w1 = kaiming_normal(k1, D, hidden)                        # (D, H)
        w2 = kaiming_normal(k2, hidden, hidden)                   # (H, H)
        w3 = kaiming_normal(k3, hidden, 1)[:, 0]                  # (H,)
        w1o_cols.append(w1[:obs_dim])
        w1a_cols.append(w1[obs_dim:])
        w2_bd = w2_bd.at[c * hidden:(c + 1) * hidden,
                         c * hidden:(c + 1) * hidden].set(w2)
        w3_p = w3_p.at[c, c * hidden:(c + 1) * hidden].set(w3)

    w1o_p = jnp.concatenate(w1o_cols, axis=1).astype(jnp.bfloat16)  # (obs_dim, 2H)
    w1a_p = jnp.concatenate(w1a_cols, axis=1).astype(jnp.bfloat16)  # (act_dim, 2H)
    b1 = 0.1 * jax.random.normal(keys[-2], (1, H2), dtype=jnp.float32)
    b2 = 0.1 * jax.random.normal(keys[-1], (1, H2), dtype=jnp.float32)
    b3 = jnp.zeros((NQ_PAD, 1), jnp.float32)                        # proj bias = 0
    return (w1o_p, w1a_p, b1, w2_bd.astype(jnp.bfloat16), b2, w3_p, b3)


# ---------------------------------------------------------------------------
# Pure-JAX per-critic reference with the same numerical recipe
# (bf16 matmul operands, f32 accumulation, f32 elementwise).
# ---------------------------------------------------------------------------
def contqf_reference(obs, act, params, critic, hidden):
    w1o_p, w1a_p, b1, w2_bd, b2, w3_p, b3 = params
    sl = slice(critic * hidden, (critic + 1) * hidden)
    B = obs.shape[0]
    obs_bf = obs.reshape(B, -1).astype(jnp.bfloat16)
    act_bf = act.reshape(B, -1).astype(jnp.bfloat16)
    h1 = (jnp.dot(obs_bf, w1o_p[:, sl], preferred_element_type=jnp.float32)
          + jnp.dot(act_bf, w1a_p[:, sl], preferred_element_type=jnp.float32)
          + b1[0, sl])
    h1 = jnp.maximum(h1, 0.0)
    h2 = jnp.dot(h1.astype(jnp.bfloat16), w2_bd[sl, sl],
                 preferred_element_type=jnp.float32) + b2[0, sl]
    h2 = jnp.maximum(h2, 0.0)
    return jnp.sum(h2 * w3_p[critic, sl], axis=-1) + b3[critic, 0]


if __name__ == "__main__":
    key = jax.random.PRNGKey(0)
    k_obs, k_act, k_par = jax.random.split(key, 3)

    # Small continuous-control shapes: Box obs (24,), Box act (8,), batch 256,
    # hidden 128 per critic (packed width 256 fills the v6e/v7x MXU).
    # B=256 -> two 128-row tiles -> both v7x TensorCores get work.
    B, OBS_DIM, ACT_DIM, HIDDEN = 256, 24, 8, 128
    obs = jax.random.normal(k_obs, (B, OBS_DIM), dtype=jnp.float32)
    act = jax.random.normal(k_act, (B, ACT_DIM), dtype=jnp.float32)

    params = make_params(k_par, OBS_DIM, ACT_DIM, HIDDEN)

    q = contqf_forward(obs, act, params)
    q = jax.block_until_ready(q)
    assert q.shape == (NUM_QF, B)

    for c in range(NUM_QF):
        q_ref = contqf_reference(obs, act, params, c, HIDDEN)
        assert jnp.allclose(q[c], q_ref, atol=2e-3, rtol=2e-3), f"mismatch critic {c}"

    print("KERNEL_OK")
</pallas_src>

<mosaic_0001>
module attributes {stable_mosaic.version = 11 : i64} {
  func.func @contqf_kernel(%arg0: i32, %arg1: memref<128x24xf32, #tpu.memory_space<vmem>>, %arg2: memref<128x8xf32, #tpu.memory_space<vmem>>, %arg3: memref<24x256xbf16, #tpu.memory_space<vmem>>, %arg4: memref<8x256xbf16, #tpu.memory_space<vmem>>, %arg5: memref<1x256xf32, #tpu.memory_space<vmem>>, %arg6: memref<256x256xbf16, #tpu.memory_space<vmem>>, %arg7: memref<1x256xf32, #tpu.memory_space<vmem>>, %arg8: memref<8x256xf32, #tpu.memory_space<vmem>>, %arg9: memref<8x1xf32, #tpu.memory_space<vmem>>, %arg10: memref<8x128xf32, #tpu.memory_space<vmem>>) attributes {dimension_semantics = [#tpu.dimension_semantics<parallel>], iteration_bounds = array<i64: 2>, scalar_prefetch = 0 : i64, scratch_operands = 0 : i64, tpu.core_type = #tpu.core_type<tc>, window_params = [{transform_indices = @transform_0, window_bounds = array<i64: 128, 24>}, {transform_indices = @transform_1, window_bounds = array<i64: 128, 8>}, {pipeline_mode = #tpu.pipeline_mode<synchronous>, transform_indices = @transform_2, window_bounds = array<i64: 24, 256>}, {pipeline_mode = #tpu.pipeline_mode<synchronous>, transform_indices = @transform_3, window_bounds = array<i64: 8, 256>}, {pipeline_mode = #tpu.pipeline_mode<synchronous>, transform_indices = @transform_4, window_bounds = array<i64: 1, 256>}, {pipeline_mode = #tpu.pipeline_mode<synchronous>, transform_indices = @transform_5, window_bounds = array<i64: 256, 256>}, {pipeline_mode = #tpu.pipeline_mode<synchronous>, transform_indices = @transform_6, window_bounds = array<i64: 1, 256>}, {pipeline_mode = #tpu.pipeline_mode<synchronous>, transform_indices = @transform_7, window_bounds = array<i64: 8, 256>}, {pipeline_mode = #tpu.pipeline_mode<synchronous>, transform_indices = @transform_8, window_bounds = array<i64: 8, 1>}, {transform_indices = @transform_9, window_bounds = array<i64: 8, 128>}]} {
    %c0 = arith.constant 0 : index
    %c0_0 = arith.constant 0 : index
    %0 = vector.load %arg1[%c0, %c0_0] : memref<128x24xf32, #tpu.memory_space<vmem>>, vector<128x24xf32>
    %1 = arith.truncf %0 : vector<128x24xf32> to vector<128x24xbf16>
    %c0_1 = arith.constant 0 : index
    %c0_2 = arith.constant 0 : index
    %2 = vector.load %arg2[%c0_1, %c0_2] : memref<128x8xf32, #tpu.memory_space<vmem>>, vector<128x8xf32>
    %3 = arith.truncf %2 : vector<128x8xf32> to vector<128x8xbf16>
    %c0_3 = arith.constant 0 : index
    %c0_4 = arith.constant 0 : index
    %4 = vector.load %arg3[%c0_3, %c0_4] : memref<24x256xbf16, #tpu.memory_space<vmem>>, vector<24x256xbf16>
    %cst = arith.constant dense<0.000000e+00> : vector<128x256xf32>
    %5 = tpu.matmul %1, %4, %cst {dimension_numbers = #tpu.dot_dimension_numbers<[1], [0], [0], [1], [0, 0, 1, 1], [], []>} : vector<128x24xbf16>, vector<24x256xbf16>, vector<128x256xf32> -> vector<128x256xf32>
    %c0_5 = arith.constant 0 : index
    %c0_6 = arith.constant 0 : index
    %6 = vector.load %arg4[%c0_5, %c0_6] : memref<8x256xbf16, #tpu.memory_space<vmem>>, vector<8x256xbf16>
    %cst_7 = arith.constant dense<0.000000e+00> : vector<128x256xf32>
    %7 = tpu.matmul %3, %6, %cst_7 {dimension_numbers = #tpu.dot_dimension_numbers<[1], [0], [0], [1], [0, 0, 1, 1], [], []>} : vector<128x8xbf16>, vector<8x256xbf16>, vector<128x256xf32> -> vector<128x256xf32>
    %8 = arith.addf %5, %7 : vector<128x256xf32>
    %c0_8 = arith.constant 0 : index
    %c0_9 = arith.constant 0 : index
    %9 = vector.load %arg5[%c0_8, %c0_9] : memref<1x256xf32, #tpu.memory_space<vmem>>, vector<1x256xf32>
    %10 = vector.broadcast %9 : vector<1x256xf32> to vector<128x256xf32>
    %11 = arith.addf %8, %10 : vector<128x256xf32>
    %cst_10 = arith.constant 0.000000e+00 : f32
    %12 = vector.broadcast %cst_10 : f32 to vector<128x256xf32>
    %13 = arith.maximumf %11, %12 : vector<128x256xf32>
    %14 = arith.truncf %13 : vector<128x256xf32> to vector<128x256xbf16>
    %c0_11 = arith.constant 0 : index
    %c0_12 = arith.constant 0 : index
    %15 = vector.load %arg6[%c0_11, %c0_12] : memref<256x256xbf16, #tpu.memory_space<vmem>>, vector<256x256xbf16>
    %cst_13 = arith.constant dense<0.000000e+00> : vector<128x256xf32>
    %16 = tpu.matmul %14, %15, %cst_13 {dimension_numbers = #tpu.dot_dimension_numbers<[1], [0], [0], [1], [0, 0, 1, 1], [], []>} : vector<128x256xbf16>, vector<256x256xbf16>, vector<128x256xf32> -> vector<128x256xf32>
    %c0_14 = arith.constant 0 : index
    %c0_15 = arith.constant 0 : index
    %17 = vector.load %arg7[%c0_14, %c0_15] : memref<1x256xf32, #tpu.memory_space<vmem>>, vector<1x256xf32>
    %18 = vector.broadcast %17 : vector<1x256xf32> to vector<128x256xf32>
    %19 = arith.addf %16, %18 : vector<128x256xf32>
    %cst_16 = arith.constant 0.000000e+00 : f32
    %20 = vector.broadcast %cst_16 : f32 to vector<128x256xf32>
    %21 = arith.maximumf %19, %20 : vector<128x256xf32>
    %c0_17 = arith.constant 0 : index
    %c0_18 = arith.constant 0 : index
    %22 = vector.load %arg8[%c0_17, %c0_18] : memref<8x256xf32, #tpu.memory_space<vmem>>, vector<8x256xf32>
    %cst_19 = arith.constant dense<0.000000e+00> : vector<8x128xf32>
    %23 = tpu.matmul %22, %21, %cst_19 {dimension_numbers = #tpu.dot_dimension_numbers<[1], [1], [0], [0], [0, 0, 1, 0], [], []>} : vector<8x256xf32>, vector<128x256xf32>, vector<8x128xf32> -> vector<8x128xf32>
    %c0_20 = arith.constant 0 : index
    %c0_21 = arith.constant 0 : index
    %24 = vector.load %arg9[%c0_20, %c0_21] : memref<8x1xf32, #tpu.memory_space<vmem>>, vector<8x1xf32>
    %25 = vector.broadcast %24 : vector<8x1xf32> to vector<8x128xf32>
    %26 = arith.addf %23, %25 : vector<8x128xf32>
    %c0_22 = arith.constant 0 : index
    %c0_23 = arith.constant 0 : index
    %27 = vector.load %arg10[%c0_22, %c0_23] : memref<8x128xf32, #tpu.memory_space<vmem>>, vector<8x128xf32>
    tpu.vector_store %arg10[%c0_22, %c0_23], %26 {strides = array<i32>} : memref<8x128xf32, #tpu.memory_space<vmem>>, vector<8x128xf32>,
    return
  }
  func.func @transform_0(%arg0: i32) -> (i32, i32) {
    %c0_i32 = arith.constant 0 : i32
    %c0_i32_0 = arith.constant 0 : i32
    return %arg0, %c0_i32 : i32, i32
  }
  func.func @transform_1(%arg0: i32) -> (i32, i32) {
    %c0_i32 = arith.constant 0 : i32
    %c0_i32_0 = arith.constant 0 : i32
    return %arg0, %c0_i32 : i32, i32
  }
  func.func @transform_2(%arg0: i32) -> (i32, i32) {
    %c0_i32 = arith.constant 0 : i32
    %c0_i32_0 = arith.constant 0 : i32
    %c0_i32_1 = arith.constant 0 : i32
    return %c0_i32, %c0_i32_0 : i32, i32
  }
  func.func @transform_3(%arg0: i32) -> (i32, i32) {
    %c0_i32 = arith.constant 0 : i32
    %c0_i32_0 = arith.constant 0 : i32
    %c0_i32_1 = arith.constant 0 : i32
    return %c0_i32, %c0_i32_0 : i32, i32
  }
  func.func @transform_4(%arg0: i32) -> (i32, i32) {
    %c0_i32 = arith.constant 0 : i32
    %c0_i32_0 = arith.constant 0 : i32
    %c0_i32_1 = arith.constant 0 : i32
    return %c0_i32, %c0_i32_0 : i32, i32
  }
  func.func @transform_5(%arg0: i32) -> (i32, i32) {
    %c0_i32 = arith.constant 0 : i32
    %c0_i32_0 = arith.constant 0 : i32
    %c0_i32_1 = arith.constant 0 : i32
    return %c0_i32, %c0_i32_0 : i32, i32
  }
  func.func @transform_6(%arg0: i32) -> (i32, i32) {
    %c0_i32 = arith.constant 0 : i32
    %c0_i32_0 = arith.constant 0 : i32
    %c0_i32_1 = arith.constant 0 : i32
    return %c0_i32, %c0_i32_0 : i32, i32
  }
  func.func @transform_7(%arg0: i32) -> (i32, i32) {
    %c0_i32 = arith.constant 0 : i32
    %c0_i32_0 = arith.constant 0 : i32
    %c0_i32_1 = arith.constant 0 : i32
    return %c0_i32, %c0_i32_0 : i32, i32
  }
  func.func @transform_8(%arg0: i32) -> (i32, i32) {
    %c0_i32 = arith.constant 0 : i32
    %c0_i32_0 = arith.constant 0 : i32
    %c0_i32_1 = arith.constant 0 : i32
    return %c0_i32, %c0_i32_0 : i32, i32
  }
  func.func @transform_9(%arg0: i32) -> (i32, i32) {
    %c0_i32 = arith.constant 0 : i32
    %c0_i32_0 = arith.constant 0 : i32
    return %c0_i32, %arg0 : i32, i32
  }
}

</mosaic_0001>

<bundles_post_ra>
// kernel: tpu_custom_call.1
= control target key start
LH: loop header
LB: loop body
LE: loop exit
PB: predicated region body
PF: predicated region fallthrough
CT: control target
= control target key end

     0   :  { %14 = vsyncpa [#allocation3], 0  ;;  %s2221_s0 = inlined_call_operand.vmem [shape: f32[256,24], index: 0, kind: input, shape index: {}]   ;;  %s2222_s1 = inlined_call_operand.vmem [shape: f32[256,8], index: 1, kind: input, shape index: {}]   ;;  %s2223_s2 = inlined_call_operand.vmem [shape: bf16[24,256], index: 2, kind: input, shape index: {}]   ;;  %s2224_s3 = inlined_call_operand.vmem [shape: bf16[8,256], index: 3, kind: input, shape index: {}]   ;;  %s2225_s4 = inlined_call_operand.vmem [shape: f32[1,256], index: 4, kind: input, shape index: {}]   ;;  %s2226_s5 = inlined_call_operand.vmem [shape: bf16[256,256], index: 5, kind: input, shape index: {}]   ;;  %s2227_s6 = inlined_call_operand.vmem [shape: f32[1,256], index: 6, kind: input, shape index: {}]   ;;  %s2228_s7 = inlined_call_operand.vmem [shape: f32[8,256], index: 7, kind: input, shape index: {}]   ;;  %s2229_s8 = inlined_call_operand.vmem [shape: f32[8,1], index: 8, kind: input, shape index: {}]   ;;  %s2230_s9 = inlined_call_operand.hbm [shape: f32[8,256], index: 9, kind: output, shape index: {}]  }
   0x1   :  { %16 = vsyncpa [#allocation3 + $0x1], 0  ;;  %s1706_s30 = smov 0   ;;  %s1708_s10 = smov 0  }
   0x2   :  { %s1710_s11 = smov 0   ;;  %s1712_s12 = smov 0  }
   0x3 LB: > { %s1727_s13 = sadd.s32 4294967295, %s1653_s12   ;;  %s1335_s14 = sadd.s32 4294967294, %s1653_s12   ;;  %s1653_s12 = sphi %s1712_s12, %s2236_s12   ;;  %s1649_s11 = sphi %s1710_s11, %s2235_s11   ;;  %s1645_s10 = sphi %s1708_s10, %s2234_s10   ;;  %s1641_s30 = sphi %s1706_s30, %s2233_s30  }
   0x4   : > { %s1731_s15 = sadd.s32 1, %s1653_s12   ;;  %s228_s16 = sadd.s32 1, %s1649_s11 }
   0x5   : > { %s225_s17 = ssub.s32 %s1653_s12, %s1731_s15  ;;  %p238_p0 = scmp.ne.s32.totalorder %s1649_s11, %s1645_s10 }
   0x6   : > { %p226_p1 = scmp.eq.s32.totalorder %s225_s17, 0  ;;  %p239_p2 = scmp.eq.s32.totalorder %s1727_s13, 1 }
   0x7   : > { %p244_p3 = scmp.ne.s32.totalorder %s1645_s10, %s1641_s30  ;;  %p245_p4 = scmp.eq.s32.totalorder %s1335_s14, 1 }
   0x8   : > { %s1742_s18 = scalar_select %p226_p1, %s1649_s11, %s228_s16  }
   0x9   : > { %p1744_p5 = por %p239_p2, %p238_p0  ;;  %p1748_p6 = por %p245_p4, %p244_p3 }
   0xa   : > { %p1338_p7 = scmp.ge.s32.totalorder %s1653_s12, 1  ;;  %p302_p8 = scmp.lt.s32.totalorder %s1653_s12, 3 }
   0xc   : > { %p303_p9 = pnand %p1338_p7, %p302_p8 }
   0xd   : > { %s1340_s25 = sshll.u32 (!%p303_p9), %s1727_s13, 4  ;;  %s340_s27 = sand.u32 (!%p303_p9), 1, %s1645_s10  }
   0xe   : > { %306 = sbr.rel (%p303_p9) target bundleno = 632 (0x278), region = 56  ;;  %p344_p10 = scmp.lt.s32.totalorder (!%p303_p9), %s1340_s25, 31 }
   0xf   : > { %s1339_s28 = sshll.u32 (!%p303_p9), %s340_s27, 3  ;;  %s1249_s23 = scalar_lea.sflag (!%p303_p9), [#allocation3], %s340_s27 }
  0x13   : > { %v406_v0 = vld [vmem:[%s2223_s2 + $0x10] sm:$0xff]  ;;  %v407_v1 = vld [vmem:[%s2224_s3] sm:$0xff]  ;;  %vm438_vm0 = vcmask 1043456   ;;  %v1517_v11 = vld [vmem:[%s2223_s2 + $0x4] sm:$0xf0]  ;;  %s2238_s25 = smov (!%p344_p10, %s1340_s25), 31 }
  0x14   : > { %v550_v2 = vunpack.c.l.b16 %v406_v0  ;;  %v551_v3 = vunpack.c.h.b16 %v406_v0  ;;  %v409_v4 = vunpack.c.l.b16 %v407_v1  ;;  %v410_v5 = vunpack.c.h.b16 %v407_v1  ;;  %v1362_v6 = vld [vmem:[%s2223_s2] sm:$0xf]  ;;  %v1516_v12 = vld [vmem:[%s2223_s2 + $0x4] sm:$0xf]  ;;  %v1364_v13 = vld [vmem:[%s2223_s2 + $0x8] sm:$0xf0] }
  0x15   : > { %v1363_v18 = vor.u32 %v1517_v11, %v1362_v6  ;;  %v1367_v19 = vor.u32 %v1516_v12, %v1364_v13  ;;  %s1341_s22 = sshll.u32 %s2238_s25, 3  ;;  %vm413_vm1 = vcmask 64512   ;;  %vm558_vm2 = vcmask 195584   ;;  %v1532_v44 = vld [vmem:[%s2226_s5 + $0x74] sm:$0xf]  ;;  %s1513_s25 = sshll.u32 %s1727_s13, 3 }
  0x16   : > { %v554_v7 = vpack.c.b16 %v550_v2, %v550_v2  ;;  %v555_v8 = vpack.c.b16 %v551_v3, %v551_v3  ;;  %v411_v9 = vpack.c.b16 %v409_v4, %v409_v4  ;;  %v412_v10 = vpack.c.b16 %v410_v5, %v410_v5  ;;  %s1776_s26 = scalar_lea.vmem %s2222_s1, %s1341_s22  ;;  %s1781_s29 = scalar_lea.vmem %s2221_s0, %s1341_s22  ;;  %v1444_v45 = vld [vmem:[%s2226_s5 + $0x78] sm:$0xf0]  ;;  %v1548_v46 = vld [vmem:[%s2226_s5 + $0xf4] sm:$0xf]  ;;  %v1442_v49 = vld [vmem:[%s2226_s5 + $0x70] sm:$0xf] }
  0x17   : > { %v380_v20 = vld [vmem:[%s1776_s26] sm:$0xff]  ;;  %v381_v21 = vld [vmem:[%s1776_s26 + $0x8] sm:$0xff]  ;;  %v382_v26 = vld [vmem:[%s1776_s26 + $0x10] sm:$0xff]  ;;  %v1447_v47 = vor.u32 %v1532_v44, %v1444_v45  ;;  %s1259_s17 = scalar_lea.hbm %s2230_s9, %s1513_s25  ;;  %s1611_s25 = scalar_lea.hbm %s2230_s9, 16 }
  0x18   : > { %v584_v14 = vsel %vm438_vm0, %v554_v7, 0  ;;  %v587_v15 = vsel %vm438_vm0, %v555_v8, 0  ;;  %v440_v16 = vsel %vm438_vm0, %v411_v9, 0  ;;  %v443_v17 = vsel %vm438_vm0, %v412_v10, 0  ;;  %v356_v22 = vld [vmem:[%s1781_s29] sm:$0xff]  ;;  %v357_v24 = vld [vmem:[%s1781_s29 + $0x8] sm:$0xff] }
  0x19   : > { %595 = vmatpush.bf16.msra.mxu2 %v584_v14  ;;  %644 = vmatpush.bf16.msra.mxu3 %v587_v15  ;;  %v396_v23 = vpack.c.bf16 %v381_v21, %v380_v20  ;;  %v372_v25 = vpack.c.bf16 %v357_v24, %v356_v22  ;;  %v383_v27 = vld [vmem:[%s1776_s26 + $0x18] sm:$0xff]  ;;  %v358_v28 = vld [vmem:[%s1781_s29 + $0x10] sm:$0xff]  ;;  %v384_v32 = vld [vmem:[%s1776_s26 + $0x20] sm:$0xff]  ;;  %s1263_s22 = sshll.u32 %s1259_s17, 4  ;;  %s1264_s22 = int_to_ptr.hbm [resolvable:$true] %s1263_s22 }
  0x1a   : > { %452 = vmatpush.bf16.msra.mxu0 %v440_v16  ;;  %501 = vmatpush.bf16.msra.mxu1 %v443_v17  ;;  %v359_v29 = vld [vmem:[%s1781_s29 + $0x18] sm:$0xff]  ;;  %v397_v30 = vpack.c.bf16 %v383_v27, %v382_v26  ;;  %v385_v33 = vld [vmem:[%s1776_s26 + $0x28] sm:$0xff]  ;;  %v360_v34 = vld [vmem:[%s1781_s29 + $0x20] sm:$0xff] }
  0x1b   : > { %v373_v31 = vpack.c.bf16 %v359_v29, %v358_v28  ;;  %v361_v35 = vld [vmem:[%s1781_s29 + $0x28] sm:$0xff]  ;;  %v398_v36 = vpack.c.bf16 %v385_v33, %v384_v32  ;;  %v386_v38 = vld [vmem:[%s1776_s26 + $0x30] sm:$0xff]  ;;  %v387_v39 = vld [vmem:[%s1776_s26 + $0x38] sm:$0xff] }
  0x1c   : > { %v374_v37 = vpack.c.bf16 %v361_v35, %v360_v34  ;;  %v362_v40 = vld [vmem:[%s1781_s29 + $0x30] sm:$0xff]  ;;  %v363_v41 = vld [vmem:[%s1781_s29 + $0x38] sm:$0xff]  ;;  %v399_v42 = vpack.c.bf16 %v387_v39, %v386_v38  ;;  %v388_v56 = vld [vmem:[%s1776_s26 + $0x40] sm:$0xff] }
  0x1d   : > { %596 = vmatpush.bf16.msra.mxu2 %v1363_v18  ;;  %645 = vmatpush.bf16.msra.mxu3 %v1367_v19  ;;  %v375_v43 = vpack.c.bf16 %v363_v41, %v362_v40  ;;  %v1508_v48 = vld [vmem:[%s2226_s5 + $0xf8] sm:$0xf0]  ;;  %v1533_v50 = vld [vmem:[%s2226_s5 + $0x74] sm:$0xf0]  ;;  %v1506_v53 = vld [vmem:[%s2226_s5 + $0xf0] sm:$0xf] }
  0x1e   : > { %1344 = vmatmul.msk.bf16.vlgmr.msra.gmra.mxu0 %vm413_vm1, %v396_v23  ;;  %1352 = vmatmul.msk.bf16.vlgmr.msra.gmra.mxu1 %vm413_vm1, %v396_v23  ;;  %v1511_v51 = vor.u32 %v1548_v46, %v1508_v48  ;;  %v1443_v52 = vor.u32 %v1533_v50, %v1442_v49  ;;  %v1549_v54 = vld [vmem:[%s2226_s5 + $0xf4] sm:$0xf0]  ;;  %v389_v57 = vld [vmem:[%s1776_s26 + $0x48] sm:$0xff]  ;;  %v364_v58 = vld [vmem:[%s1781_s29 + $0x40] sm:$0xff] }
  0x1f   : > { %v1507_v55 = vor.u32 %v1549_v54, %v1506_v53  ;;  %v365_v59 = vld [vmem:[%s1781_s29 + $0x48] sm:$0xff]  ;;  %v400_v60 = vpack.c.bf16 %v389_v57, %v388_v56  ;;  %v1530_v62 = vld [vmem:[%s2226_s5 + $0x64] sm:$0xf]  ;;  %v1434_v3 = vld [vmem:[%s2226_s5 + $0x60] sm:$0xf] }
  0x20   : > { %1368 = vmatmul.msk.bf16.vlgmr.msra.gmra.mxu2 %vm558_vm2, %v372_v25  ;;  %1376 = vmatmul.msk.bf16.vlgmr.msra.gmra.mxu3 %vm558_vm2, %v372_v25  ;;  %v376_v61 = vpack.c.bf16 %v365_v59, %v364_v58  ;;  %v1436_v63 = vld [vmem:[%s2226_s5 + $0x68] sm:$0xf0]  ;;  %v1546_v0 = vld [vmem:[%s2226_s5 + $0xe4] sm:$0xf]  ;;  %v1531_v4 = vld [vmem:[%s2226_s5 + $0x64] sm:$0xf0] }
  0x21   : > { %1069 = vmatpush.bf16.msrb.mxu2 %v1447_v47  ;;  %1118 = vmatpush.bf16.msrb.mxu3 %v1511_v51  ;;  %v1439_v1 = vor.u32 %v1530_v62, %v1436_v63  ;;  %v1500_v2 = vld [vmem:[%s2226_s5 + $0xe8] sm:$0xf0]  ;;  %v1435_v6 = vor.u32 %v1531_v4, %v1434_v3  ;;  %v1498_v7 = vld [vmem:[%s2226_s5 + $0xe0] sm:$0xf]  ;;  %v1547_v8 = vld [vmem:[%s2226_s5 + $0xe4] sm:$0xf0] }
  0x22   : > { %971 = vmatpush.bf16.msrb.mxu0 %v1443_v52  ;;  %1020 = vmatpush.bf16.msrb.mxu1 %v1507_v55  ;;  %v1503_v5 = vor.u32 %v1546_v0, %v1500_v2  ;;  %v1499_v9 = vor.u32 %v1547_v8, %v1498_v7  ;;  %v390_v10 = vld [vmem:[%s1776_s26 + $0x50] sm:$0xff]  ;;  %v391_v11 = vld [vmem:[%s1776_s26 + $0x58] sm:$0xff]  ;;  %v392_v25 = vld [vmem:[%s1776_s26 + $0x60] sm:$0xff] }
  0x23   : > { %v366_v12 = vld [vmem:[%s1781_s29 + $0x50] sm:$0xff]  ;;  %v367_v13 = vld [vmem:[%s1781_s29 + $0x58] sm:$0xff]  ;;  %v401_v14 = vpack.c.bf16 %v391_v11, %v390_v10  ;;  %v393_v26 = vld [vmem:[%s1776_s26 + $0x68] sm:$0xff] }
  0x24   : > { %v377_v15 = vpack.c.bf16 %v367_v13, %v366_v12  ;;  %v1528_v16 = vld [vmem:[%s2226_s5 + $0x54] sm:$0xf]  ;;  %v1428_v17 = vld [vmem:[%s2226_s5 + $0x58] sm:$0xf0]  ;;  %v1426_v21 = vld [vmem:[%s2226_s5 + $0x50] sm:$0xf]  ;;  %v402_v29 = vpack.c.bf16 %v393_v26, %v392_v25 }
  0x25   : > { %1070 = vmatpush.bf16.msrb.mxu2 %v1439_v1  ;;  %1119 = vmatpush.bf16.msrb.mxu3 %v1503_v5  ;;  %v1544_v18 = vld [vmem:[%s2226_s5 + $0xd4] sm:$0xf]  ;;  %v1431_v19 = vor.u32 %v1528_v16, %v1428_v17  ;;  %v1492_v20 = vld [vmem:[%s2226_s5 + $0xd8] sm:$0xf0]  ;;  %v1529_v22 = vld [vmem:[%s2226_s5 + $0x54] sm:$0xf0] }
  0x26   : > { %972 = vmatpush.bf16.msrb.mxu0 %v1435_v6  ;;  %1021 = vmatpush.bf16.msrb.mxu1 %v1499_v9  ;;  %v1495_v23 = vor.u32 %v1544_v18, %v1492_v20  ;;  %v1427_v24 = vor.u32 %v1529_v22, %v1426_v21  ;;  %v368_v27 = vld [vmem:[%s1781_s29 + $0x60] sm:$0xff]  ;;  %v369_v28 = vld [vmem:[%s1781_s29 + $0x68] sm:$0xff]  ;;  %v1410_v46 = vld [vmem:[%s2226_s5 + $0x30] sm:$0xf] }
  0x27   : > { %v1418_v33 = vld [vmem:[%s2226_s5 + $0x40] sm:$0xf]  ;;  %v1527_v34 = vld [vmem:[%s2226_s5 + $0x44] sm:$0xf0]  ;;  %v1526_v39 = vld [vmem:[%s2226_s5 + $0x44] sm:$0xf] }
  0x28   : > { %v1482_v35 = vld [vmem:[%s2226_s5 + $0xc0] sm:$0xf]  ;;  %v1543_v38 = vld [vmem:[%s2226_s5 + $0xc4] sm:$0xf0]  ;;  %v1420_v40 = vld [vmem:[%s2226_s5 + $0x48] sm:$0xf0] }
  0x29   : > { %1071 = vmatpush.bf16.msrb.mxu2 %v1431_v19  ;;  %1120 = vmatpush.bf16.msrb.mxu3 %v1495_v23  ;;  %v1483_v41 = vor.u32 %v1543_v38, %v1482_v35  ;;  %v1484_v44 = vld [vmem:[%s2226_s5 + $0xc8] sm:$0xf0]  ;;  %v1525_v47 = vld [vmem:[%s2226_s5 + $0x34] sm:$0xf0]  ;;  %v1474_v49 = vld [vmem:[%s2226_s5 + $0xb0] sm:$0xf] }
  0x2a   : > { %973 = vmatpush.bf16.msrb.mxu0 %v1427_v24  ;;  %v1411_v48 = vor.u32 %v1525_v47, %v1410_v46  ;;  %v1541_v50 = vld [vmem:[%s2226_s5 + $0xb4] sm:$0xf0]  ;;  %v1524_v52 = vld [vmem:[%s2226_s5 + $0x34] sm:$0xf]  ;;  %v1412_v53 = vld [vmem:[%s2226_s5 + $0x38] sm:$0xf0] }
  0x2b   : > { %v1475_v51 = vor.u32 %v1541_v50, %v1474_v49  ;;  %v1540_v54 = vld [vmem:[%s2226_s5 + $0xb4] sm:$0xf]  ;;  %v395_v56 = vld [vmem:[%s1776_s26 + $0x78] sm:$0xff]  ;;  %v1415_v57 = vor.u32 %v1524_v52, %v1412_v53  ;;  %v1402_v62 = vld [vmem:[%s2226_s5 + $0x20] sm:$0xf] }
  0x2c   : > { %v394_v55 = vld [vmem:[%s1776_s26 + $0x70] sm:$0xff]  ;;  %v1476_v58 = vld [vmem:[%s2226_s5 + $0xb8] sm:$0xf0]  ;;  %v1523_v63 = vld [vmem:[%s2226_s5 + $0x24] sm:$0xf0]  ;;  %s342_s26 = scalar_lea.vmem [#allocation2], %s1339_s28 }
  0x2d   : > { %v370_v59 = vld [vmem:[%s1781_s29 + $0x70] sm:$0xff]  ;;  %v1403_v0 = vor.u32 %v1523_v63, %v1402_v62  ;;  %v1466_v1 = vld [vmem:[%s2226_s5 + $0xa0] sm:$0xf]  ;;  %v1539_v2 = vld [vmem:[%s2226_s5 + $0xa4] sm:$0xf0]  ;;  %v403_v8 = vpack.c.bf16 %v395_v56, %v394_v55  ;;  %s1261_s21 = sshll.u32 %s342_s26, 4  ;;  %s1262_s21 = int_to_ptr.vmem [resolvable:$true] %s1261_s21 }
  0x2e   : > { %1345 = vmatmul.msk.bf16.gmra.mxu0 %vm413_vm1, %v397_v30  ;;  %1353 = vmatmul.msk.bf16.gmra.mxu1 %vm413_vm1, %v397_v30  ;;  %v1490_v30 = vld [vmem:[%s2226_s5 + $0xd0] sm:$0xf]  ;;  %v1522_v3 = vld [vmem:[%s2226_s5 + $0x24] sm:$0xf]  ;;  %v1467_v4 = vor.u32 %v1539_v2, %v1466_v1  ;;  %v1404_v5 = vld [vmem:[%s2226_s5 + $0x28] sm:$0xf0] }
  0x2f   : > { %v1538_v6 = vld [vmem:[%s2226_s5 + $0xa4] sm:$0xf]  ;;  %v1468_v7 = vld [vmem:[%s2226_s5 + $0xa8] sm:$0xf0]  ;;  %v1407_v9 = vor.u32 %v1522_v3, %v1404_v5  ;;  %v1394_v11 = vld [vmem:[%s2226_s5 + $0x10] sm:$0xf] }
  0x30   : > { %1369 = vmatmul.msk.bf16.gmra.mxu2 %vm558_vm2, %v373_v31  ;;  %1377 = vmatmul.msk.bf16.gmra.mxu3 %vm558_vm2, %v373_v31  ;;  %v1545_v31 = vld [vmem:[%s2226_s5 + $0xd4] sm:$0xf0]  ;;  %v1471_v10 = vor.u32 %v1538_v6, %v1468_v7  ;;  %v1458_v13 = vld [vmem:[%s2226_s5 + $0x90] sm:$0xf]  ;;  %v1520_v17 = vld [vmem:[%s2226_s5 + $0x14] sm:$0xf] }
  0x31   : > { %v1491_v32 = vor.u32 %v1545_v31, %v1490_v30  ;;  %v1521_v12 = vld [vmem:[%s2226_s5 + $0x14] sm:$0xf0]  ;;  %v1396_v18 = vld [vmem:[%s2226_s5 + $0x18] sm:$0xf0]  ;;  %v1536_v21 = vld [vmem:[%s2226_s5 + $0x94] sm:$0xf] }
  0x32   : > { %v1537_v16 = vld [vmem:[%s2226_s5 + $0x94] sm:$0xf0]  ;;  %v1399_v20 = vor.u32 %v1520_v17, %v1396_v18  ;;  %v1460_v22 = vld [vmem:[%s2226_s5 + $0x98] sm:$0xf0]  ;;  %v1386_v24 = vld [vmem:[%s2226_s5] sm:$0xf] }
  0x33   : > { %1022 = vmatpush.bf16.msrb.mxu1 %v1491_v32  ;;  %v1459_v19 = vor.u32 %v1537_v16, %v1458_v13  ;;  %v1463_v23 = vor.u32 %v1536_v21, %v1460_v22  ;;  %v1519_v25 = vld [vmem:[%s2226_s5 + $0x4] sm:$0xf0]  ;;  %v1450_v26 = vld [vmem:[%s2226_s5 + $0x80] sm:$0xf]  ;;  %v1388_v30 = vld [vmem:[%s2226_s5 + $0x8] sm:$0xf0] }
  0x37   : > { %1023 = vmatpush.bf16.msrb.mxu1 %v1483_v41 }
  0x3b   : > { %1024 = vmatpush.bf16.msrb.mxu1 %v1475_v51 }
  0x3e   : > { %1346 = vmatmul.msk.bf16.gmra.mxu0 %vm413_vm1, %v398_v36  ;;  %1354 = vmatmul.msk.bf16.gmra.mxu1 %vm413_vm1, %v398_v36  ;;  %v378_v36 = vpack.c.bf16 %v369_v28, %v368_v27  ;;  %v1387_v27 = vor.u32 %v1519_v25, %v1386_v24  ;;  %v1535_v28 = vld [vmem:[%s2226_s5 + $0x84] sm:$0xf0] }
  0x3f   : > { %1025 = vmatpush.bf16.msrb.mxu1 %v1467_v4  ;;  %v1451_v31 = vor.u32 %v1535_v28, %v1450_v26 }
  0x40   : > { %1370 = vmatmul.msk.bf16.gmra.mxu2 %vm558_vm2, %v374_v37  ;;  %1378 = vmatmul.msk.bf16.gmra.mxu3 %vm558_vm2, %v374_v37  ;;  %v1419_v37 = vor.u32 %v1527_v34, %v1418_v33  ;;  %v1534_v33 = vld [vmem:[%s2226_s5 + $0x84] sm:$0xf]  ;;  %v1452_v34 = vld [vmem:[%s2226_s5 + $0x88] sm:$0xf0] }
  0x41   : > { %v1455_v35 = vor.u32 %v1534_v33, %v1452_v34 }
  0x42   : > { %974 = vmatpush.bf16.msrb.mxu0 %v1419_v37 }
  0x43   : > { %1026 = vmatpush.bf16.msrb.mxu1 %v1459_v19 }
  0x46   : > { %975 = vmatpush.bf16.msrb.mxu0 %v1411_v48 }
  0x47   : > { %1027 = vmatpush.bf16.msrb.mxu1 %v1451_v31 }
  0x4a   : > { %976 = vmatpush.bf16.msrb.mxu0 %v1403_v0 }
  0x4e   : > { %1347 = vmatmul.msk.bf16.gmra.mxu0 %vm413_vm1, %v399_v42  ;;  %1355 = vmatmul.msk.bf16.gmra.mxu1 %vm413_vm1, %v399_v42  ;;  %v1423_v42 = vor.u32 %v1526_v39, %v1420_v40 }
  0x50   : > { %1371 = vmatmul.msk.bf16.gmra.mxu2 %vm558_vm2, %v375_v43  ;;  %1379 = vmatmul.msk.bf16.gmra.mxu3 %vm558_vm2, %v375_v43  ;;  %v1542_v43 = vld [vmem:[%s2226_s5 + $0xc4] sm:$0xf] }
  0x51   : > { %v1487_v45 = vor.u32 %v1542_v43, %v1484_v44  ;;  %1072 = vmatpush.bf16.msrb.mxu2 %v1423_v42  ;;  %v687_v42 = vld [vmem:[%s2225_s4] sm:$0x3] }
  0x52   : > { %v2042_v44 = vperm.slane %v687_v42, 0  ;;  %v2044_v46 = vperm.slane %v687_v42, 1 }
  0x53   : > { %1121 = vmatpush.bf16.msrb.mxu3 %v1487_v45 }
  0x55   : > { %1073 = vmatpush.bf16.msrb.mxu2 %v1415_v57 }
  0x59   : > { %1074 = vmatpush.bf16.msrb.mxu2 %v1407_v9 }
  0x5d   : > { %1075 = vmatpush.bf16.msrb.mxu2 %v1399_v20 }
  0x5e   : > { %1348 = vmatmul.msk.bf16.gmra.mxu0 %vm413_vm1, %v400_v60  ;;  %1356 = vmatmul.msk.bf16.gmra.mxu1 %vm413_vm1, %v400_v60  ;;  %v371_v60 = vld [vmem:[%s1781_s29 + $0x78] sm:$0xff]  ;;  %s1605_s29 = sshra.s32 %s1264_s22, 4  ;;  %s1606_s29 = int_to_ptr.hbm [resolvable:$true] %s1605_s29 }
  0x5f   : > { %s1607_s13 = scalar_lea.hbm %s1606_s29, 8  ;;  %p1612_p0 = scmp.lt.s32.totalorder %s1606_s29, %s2230_s9 }
  0x60   : > { %1372 = vmatmul.msk.bf16.gmra.mxu2 %vm558_vm2, %v376_v61  ;;  %1380 = vmatmul.msk.bf16.gmra.mxu3 %vm558_vm2, %v376_v61  ;;  %v1479_v61 = vor.u32 %v1540_v54, %v1476_v58  ;;  %p1608_p11 = scmp.ne.s32.totalorder %s1606_s29, %s1607_s13  ;;  %p1613_p1 = scmp.lt.s32.totalorder %s1611_s25, %s1607_s13 }
  0x62   : > { %1122 = vmatpush.bf16.msrb.mxu3 %v1479_v61  ;;  %p1609_p12 = pnand %p1608_p11, %p1744_p5  ;;  %p1614_p2 = por %p1613_p1, %p1612_p0 }
  0x64   : > { %p1610_p13 = pneg %p1609_p12 }
  0x66   : > { %1123 = vmatpush.bf16.msrb.mxu3 %v1471_v10  ;;  %p1615_p3 = pnand %p1614_p2, %p1610_p13 }
  0x6a   : > { %1124 = vmatpush.bf16.msrb.mxu3 %v1463_v23 }
  0x6e   : > { %1349 = vmatmul.msk.bf16.gmra.mxu0 %vm413_vm1, %v401_v14  ;;  %1357 = vmatmul.msk.bf16.gmra.mxu1 %vm413_vm1, %v401_v14  ;;  %v379_v14 = vpack.c.bf16 %v371_v60, %v370_v59 }
  0x6f   : > { %1125 = vmatpush.bf16.msrb.mxu3 %v1455_v35 }
  0x70   : > { %1373 = vmatmul.msk.bf16.gmra.mxu2 %vm558_vm2, %v377_v15  ;;  %1381 = vmatmul.msk.bf16.gmra.mxu3 %vm558_vm2, %v377_v15  ;;  %v1395_v15 = vor.u32 %v1521_v12, %v1394_v11 }
  0x72   : > { %977 = vmatpush.bf16.msrb.mxu0 %v1395_v15 }
  0x76   : > { %978 = vmatpush.bf16.msrb.mxu0 %v1387_v27 }
  0x7e   : > { %1350 = vmatmul.msk.bf16.gmra.mxu0 %vm413_vm1, %v402_v29  ;;  %1358 = vmatmul.msk.bf16.gmra.mxu1 %vm413_vm1, %v402_v29  ;;  %v1518_v29 = vld [vmem:[%s2226_s5 + $0x4] sm:$0xf] }
  0x7f   : > { %v1391_v32 = vor.u32 %v1518_v29, %v1388_v30 }
  0x80   : > { %1374 = vmatmul.msk.bf16.gmra.mxu2 %vm558_vm2, %v378_v36  ;;  %1382 = vmatmul.msk.bf16.gmra.mxu3 %vm558_vm2, %v378_v36 }
  0x81   : > { %1076 = vmatpush.bf16.msrb.mxu2 %v1391_v32 }
  0x8e   : > { %1351 = vmatmul.msk.bf16.gmra.mxu0 %vm413_vm1, %v403_v8  ;;  %1359 = vmatmul.msk.bf16.gmra.mxu1 %vm413_vm1, %v403_v8 }
  0x90   : > { %1375 = vmatmul.msk.bf16.gmra.mxu2 %vm558_vm2, %v379_v14  ;;  %1383 = vmatmul.msk.bf16.gmra.mxu3 %vm558_vm2, %v379_v14 }
  0x9b   : > { %v454_v36 = vpop.f32.mrf.mxu0  ;;  %v503_v37 = vpop.f32.mrf.mxu1 }
  0xa3   : > { %v456_v38 = vpop.f32.mrf.mxu0  ;;  %v598_v39 = vpop.f32.mrf.mxu2 }
  0xa4   : > { %v647_v40 = vpop.f32.mrf.mxu3  ;;  %v505_v41 = vpop.f32.mrf.mxu1  ;;  %v599_v43 = vadd.f32 %v598_v39, %v454_v36 }
  0xa5   : > { %v648_v45 = vadd.f32 %v647_v40, %v503_v37 }
  0xa6   : > { %v693_v49 = vadd.f32 %v2042_v44, %v599_v43 }
  0xa7   : > { %v694_v53 = vadd.f32 %v2044_v46, %v648_v45 }
  0xa8   : > { %v725_v57 = vmax.f32 %v693_v49, 0.0 }
  0xa9   : > { %v726_v59 = vmax.f32 %v694_v53, 0.0 }
  0xab   : > { %v459_v47 = vpop.f32.mrf.mxu0  ;;  %v600_v48 = vpop.f32.mrf.mxu2 }
  0xac   : > { %v601_v50 = vadd.f32 %v600_v48, %v456_v38  ;;  %v649_v51 = vpop.f32.mrf.mxu3  ;;  %v508_v52 = vpop.f32.mrf.mxu1 }
  0xad   : > { %v650_v54 = vadd.f32 %v649_v51, %v505_v41 }
  0xae   : > { %v695_v55 = vadd.f32 %v2042_v44, %v601_v50 }
  0xaf   : > { %v696_v56 = vadd.f32 %v2044_v46, %v650_v54 }
  0xb0   : > { %v727_v58 = vmax.f32 %v695_v55, 0.0 }
  0xb1   : > { %v728_v60 = vmax.f32 %v696_v56, 0.0 }
  0xb2   : > { %v757_v61 = vpack.c.bf16 %v727_v58, %v725_v57 }
  0xb3   : > { %v461_v62 = vpop.f32.mrf.mxu0  ;;  %v603_v63 = vpop.f32.mrf.mxu2  ;;  %v758_v0 = vpack.c.bf16 %v728_v60, %v726_v59 }
  0xb4   : > { %v652_v1 = vpop.f32.mrf.mxu3  ;;  %979 = vmatmul.bf16.vlgmr.msrb.gmra.mxu0 %v757_v61  ;;  %1077 = vmatmul.bf16.vlgmr.msrb.gmra.mxu2 %v757_v61  ;;  %v510_v2 = vpop.f32.mrf.mxu1  ;;  %v604_v3 = vadd.f32 %v603_v63, %v459_v47 }
  0xb5   : > { %1028 = vmatmul.bf16.vlgmr.msrb.gmra.mxu1 %v758_v0  ;;  %1126 = vmatmul.bf16.vlgmr.msrb.gmra.mxu3 %v758_v0  ;;  %v653_v4 = vadd.f32 %v652_v1, %v508_v52 }
  0xb6   : > { %v697_v7 = vadd.f32 %v2042_v44, %v604_v3 }
  0xb7   : > { %v698_v11 = vadd.f32 %v2044_v46, %v653_v4 }
  0xb8   : > { %v729_v15 = vmax.f32 %v697_v7, 0.0 }
  0xb9   : > { %v730_v17 = vmax.f32 %v698_v11, 0.0 }
  0xbb   : > { %v464_v5 = vpop.f32.mrf.mxu0  ;;  %v605_v6 = vpop.f32.mrf.mxu2 }
  0xbc   : > { %v606_v8 = vadd.f32 %v605_v6, %v461_v62  ;;  %v654_v9 = vpop.f32.mrf.mxu3  ;;  %v513_v10 = vpop.f32.mrf.mxu1 }
  0xbd   : > { %v655_v12 = vadd.f32 %v654_v9, %v510_v2 }
  0xbe   : > { %v699_v13 = vadd.f32 %v2042_v44, %v606_v8 }
  0xbf   : > { %v700_v14 = vadd.f32 %v2044_v46, %v655_v12 }
  0xc0   : > { %v731_v16 = vmax.f32 %v699_v13, 0.0 }
  0xc1   : > { %v732_v18 = vmax.f32 %v700_v14, 0.0 }
  0xc2   : > { %v759_v19 = vpack.c.bf16 %v731_v16, %v729_v15 }
  0xc3   : > { %v466_v20 = vpop.f32.mrf.mxu0  ;;  %v608_v21 = vpop.f32.mrf.mxu2  ;;  %v760_v22 = vpack.c.bf16 %v732_v18, %v730_v17 }
  0xc4   : > { %v657_v23 = vpop.f32.mrf.mxu3  ;;  %984 = vmatmul.bf16.gmra.mxu0 %v759_v19  ;;  %1082 = vmatmul.bf16.gmra.mxu2 %v759_v19  ;;  %v515_v24 = vpop.f32.mrf.mxu1  ;;  %v609_v25 = vadd.f32 %v608_v21, %v464_v5 }
  0xc5   : > { %1033 = vmatmul.bf16.gmra.mxu1 %v760_v22  ;;  %1131 = vmatmul.bf16.gmra.mxu3 %v760_v22  ;;  %v658_v26 = vadd.f32 %v657_v23, %v513_v10 }
  0xc6   : > { %v701_v29 = vadd.f32 %v2042_v44, %v609_v25 }
  0xc7   : > { %v702_v33 = vadd.f32 %v2044_v46, %v658_v26 }
  0xc8   : > { %v733_v37 = vmax.f32 %v701_v29, 0.0 }
  0xc9   : > { %v734_v39 = vmax.f32 %v702_v33, 0.0 }
  0xcb   : > { %v469_v27 = vpop.f32.mrf.mxu0  ;;  %v610_v28 = vpop.f32.mrf.mxu2 }
  0xcc   : > { %v611_v30 = vadd.f32 %v610_v28, %v466_v20  ;;  %v659_v31 = vpop.f32.mrf.mxu3  ;;  %v518_v32 = vpop.f32.mrf.mxu1 }
  0xcd   : > { %v660_v34 = vadd.f32 %v659_v31, %v515_v24 }
  0xce   : > { %v703_v35 = vadd.f32 %v2042_v44, %v611_v30 }
  0xcf   : > { %v704_v36 = vadd.f32 %v2044_v46, %v660_v34 }
  0xd0   : > { %v735_v38 = vmax.f32 %v703_v35, 0.0 }
  0xd1   : > { %v736_v40 = vmax.f32 %v704_v36, 0.0 }
  0xd2   : > { %v761_v41 = vpack.c.bf16 %v735_v38, %v733_v37 }
  0xd3   : > { %v471_v42 = vpop.f32.mrf.mxu0  ;;  %v613_v43 = vpop.f32.mrf.mxu2  ;;  %v762_v45 = vpack.c.bf16 %v736_v40, %v734_v39 }
  0xd4   : > { %v662_v47 = vpop.f32.mrf.mxu3  ;;  %989 = vmatmul.bf16.gmra.mxu0 %v761_v41  ;;  %1087 = vmatmul.bf16.gmra.mxu2 %v761_v41  ;;  %v520_v48 = vpop.f32.mrf.mxu1  ;;  %v614_v49 = vadd.f32 %v613_v43, %v469_v27 }
  0xd5   : > { %1038 = vmatmul.bf16.gmra.mxu1 %v762_v45  ;;  %1136 = vmatmul.bf16.gmra.mxu3 %v762_v45  ;;  %v663_v50 = vadd.f32 %v662_v47, %v518_v32 }
  0xd6   : > { %v705_v53 = vadd.f32 %v2042_v44, %v614_v49 }
  0xd7   : > { %v706_v57 = vadd.f32 %v2044_v46, %v663_v50 }
  0xd8   : > { %v737_v61 = vmax.f32 %v705_v53, 0.0 }
  0xd9   : > { %v738_v63 = vmax.f32 %v706_v57, 0.0 }
  0xdb   : > { %v474_v51 = vpop.f32.mrf.mxu0  ;;  %v615_v52 = vpop.f32.mrf.mxu2 }
  0xdc   : > { %v616_v54 = vadd.f32 %v615_v52, %v471_v42  ;;  %v664_v55 = vpop.f32.mrf.mxu3  ;;  %v523_v56 = vpop.f32.mrf.mxu1 }
  0xdd   : > { %v665_v58 = vadd.f32 %v664_v55, %v520_v48 }
  0xde   : > { %v707_v59 = vadd.f32 %v2042_v44, %v616_v54 }
  0xdf   : > { %v708_v60 = vadd.f32 %v2044_v46, %v665_v58 }
  0xe0   : > { %v739_v62 = vmax.f32 %v707_v59, 0.0 }
  0xe1   : > { %v740_v0 = vmax.f32 %v708_v60, 0.0 }
  0xe2   : > { %v763_v1 = vpack.c.bf16 %v739_v62, %v737_v61 }
  0xe3   : > { %v476_v2 = vpop.f32.mrf.mxu0  ;;  %v618_v3 = vpop.f32.mrf.mxu2  ;;  %v764_v4 = vpack.c.bf16 %v740_v0, %v738_v63 }
  0xe4   : > { %v667_v5 = vpop.f32.mrf.mxu3  ;;  %994 = vmatmul.bf16.gmra.mxu0 %v763_v1  ;;  %1092 = vmatmul.bf16.gmra.mxu2 %v763_v1  ;;  %v525_v6 = vpop.f32.mrf.mxu1  ;;  %v619_v7 = vadd.f32 %v618_v3, %v474_v51 }
  0xe5   : > { %1043 = vmatmul.bf16.gmra.mxu1 %v764_v4  ;;  %1141 = vmatmul.bf16.gmra.mxu3 %v764_v4  ;;  %v668_v8 = vadd.f32 %v667_v5, %v523_v56 }
  0xe6   : > { %v709_v11 = vadd.f32 %v2042_v44, %v619_v7 }
  0xe7   : > { %v710_v15 = vadd.f32 %v2044_v46, %v668_v8 }
  0xe8   : > { %v741_v19 = vmax.f32 %v709_v11, 0.0 }
  0xe9   : > { %v742_v21 = vmax.f32 %v710_v15, 0.0 }
  0xeb   : > { %v479_v9 = vpop.f32.mrf.mxu0  ;;  %v620_v10 = vpop.f32.mrf.mxu2 }
  0xec   : > { %v621_v12 = vadd.f32 %v620_v10, %v476_v2  ;;  %v669_v13 = vpop.f32.mrf.mxu3  ;;  %v528_v14 = vpop.f32.mrf.mxu1 }
  0xed   : > { %v670_v16 = vadd.f32 %v669_v13, %v525_v6 }
  0xee   : > { %v711_v17 = vadd.f32 %v2042_v44, %v621_v12 }
  0xef   : > { %v712_v18 = vadd.f32 %v2044_v46, %v670_v16 }
  0xf0   : > { %v743_v20 = vmax.f32 %v711_v17, 0.0 }
  0xf1   : > { %v744_v22 = vmax.f32 %v712_v18, 0.0 }
  0xf2   : > { %v765_v23 = vpack.c.bf16 %v743_v20, %v741_v19 }
  0xf3   : > { %v481_v24 = vpop.f32.mrf.mxu0  ;;  %v623_v25 = vpop.f32.mrf.mxu2  ;;  %v766_v26 = vpack.c.bf16 %v744_v22, %v742_v21 }
  0xf4   : > { %v672_v27 = vpop.f32.mrf.mxu3  ;;  %999 = vmatmul.bf16.gmra.mxu0 %v765_v23  ;;  %1097 = vmatmul.bf16.gmra.mxu2 %v765_v23  ;;  %v530_v28 = vpop.f32.mrf.mxu1  ;;  %v624_v29 = vadd.f32 %v623_v25, %v479_v9 }
  0xf5   : > { %1048 = vmatmul.bf16.gmra.mxu1 %v766_v26  ;;  %1146 = vmatmul.bf16.gmra.mxu3 %v766_v26  ;;  %v673_v30 = vadd.f32 %v672_v27, %v528_v14  ;;  %v805_v27 = vld [vmem:[%s2227_s6] sm:$0x3] }
  0xf6   : > { %v713_v32 = vadd.f32 %v2042_v44, %v624_v29 }
  0xf7   : > { %v714_v35 = vadd.f32 %v2044_v46, %v673_v30 }
  0xf8   : > { %v745_v41 = vmax.f32 %v713_v32, 0.0 }
  0xf9   : > { %v746_v43 = vmax.f32 %v714_v35, 0.0 }
  0xfb   : > { %v625_v31 = vpop.f32.mrf.mxu2  ;;  %v484_v36 = vpop.f32.mrf.mxu0 }
  0xfc   : > { %v626_v33 = vadd.f32 %v625_v31, %v481_v24  ;;  %v674_v34 = vpop.f32.mrf.mxu3  ;;  %v533_v39 = vpop.f32.mrf.mxu1  ;;  %v2086_v31 = vperm.slane %v805_v27, 1 }
  0xfd   : > { %v675_v37 = vadd.f32 %v674_v34, %v530_v28  ;;  %v2081_v28 = vperm.slane %v805_v27, 0 }
  0xfe   : > { %v715_v38 = vadd.f32 %v2042_v44, %v626_v33 }
  0xff   : > { %v716_v40 = vadd.f32 %v2044_v46, %v675_v37 }
 0x100   : > { %v747_v42 = vmax.f32 %v715_v38, 0.0 }
 0x101   : > { %v748_v45 = vmax.f32 %v716_v40, 0.0 }
 0x102   : > { %v767_v47 = vpack.c.bf16 %v747_v42, %v745_v41 }
 0x103   : > { %v628_v48 = vpop.f32.mrf.mxu2  ;;  %v768_v49 = vpack.c.bf16 %v748_v45, %v746_v43  ;;  %v486_v51 = vpop.f32.mrf.mxu0 }
 0x104   : > { %v677_v50 = vpop.f32.mrf.mxu3  ;;  %1004 = vmatmul.bf16.gmra.mxu0 %v767_v47  ;;  %1102 = vmatmul.bf16.gmra.mxu2 %v767_v47  ;;  %v629_v52 = vadd.f32 %v628_v48, %v484_v36  ;;  %v535_v53 = vpop.f32.mrf.mxu1 }
 0x105   : > { %1053 = vmatmul.bf16.gmra.mxu1 %v768_v49  ;;  %1151 = vmatmul.bf16.gmra.mxu3 %v768_v49  ;;  %v678_v54 = vadd.f32 %v677_v50, %v533_v39 }
 0x106   : > { %v717_v56 = vadd.f32 %v2042_v44, %v629_v52 }
 0x107   : > { %v718_v59 = vadd.f32 %v2044_v46, %v678_v54 }
 0x108   : > { %v749_v63 = vmax.f32 %v717_v56, 0.0 }
 0x109   : > { %v750_v1 = vmax.f32 %v718_v59, 0.0 }
 0x10b   : > { %v630_v55 = vpop.f32.mrf.mxu2  ;;  %v489_v2 = vpop.f32.mrf.mxu0 }
 0x10c   : > { %v631_v57 = vadd.f32 %v630_v55, %v486_v51  ;;  %v679_v58 = vpop.f32.mrf.mxu3  ;;  %v538_v4 = vpop.f32.mrf.mxu1 }
 0x10d   : > { %v680_v60 = vadd.f32 %v679_v58, %v535_v53 }
 0x10e   : > { %v719_v61 = vadd.f32 %v2042_v44, %v631_v57 }
 0x10f   : > { %v720_v62 = vadd.f32 %v2044_v46, %v680_v60 }
 0x110   : > { %v751_v0 = vmax.f32 %v719_v61, 0.0 }
 0x111   : > { %v752_v3 = vmax.f32 %v720_v62, 0.0 }
 0x112   : > { %v769_v5 = vpack.c.bf16 %v751_v0, %v749_v63 }
 0x113   : > { %v633_v6 = vpop.f32.mrf.mxu2  ;;  %v770_v7 = vpack.c.bf16 %v752_v3, %v750_v1  ;;  %v491_v11 = vpop.f32.mrf.mxu0 }
 0x114   : > { %v682_v8 = vpop.f32.mrf.mxu3  ;;  %1009 = vmatmul.bf16.gmra.mxu0 %v769_v5  ;;  %1107 = vmatmul.bf16.gmra.mxu2 %v769_v5  ;;  %v634_v9 = vadd.f32 %v633_v6, %v489_v2  ;;  %v540_v14 = vpop.f32.mrf.mxu1 }
 0x115   : > { %1058 = vmatmul.bf16.gmra.mxu1 %v770_v7  ;;  %1156 = vmatmul.bf16.gmra.mxu3 %v770_v7  ;;  %v683_v10 = vadd.f32 %v682_v8, %v538_v4 }
 0x116   : > { %v721_v13 = vadd.f32 %v2042_v44, %v634_v9 }
 0x117   : > { %v722_v17 = vadd.f32 %v2044_v46, %v683_v10 }
 0x118   : > { %v753_v21 = vmax.f32 %v721_v13, 0.0 }
 0x119   : > { %v754_v23 = vmax.f32 %v722_v17, 0.0 }
 0x11b   : > { %v635_v12 = vpop.f32.mrf.mxu2 }
 0x11c   : > { %v636_v15 = vadd.f32 %v635_v12, %v491_v11  ;;  %v684_v16 = vpop.f32.mrf.mxu3 }
 0x11d   : > { %v685_v18 = vadd.f32 %v684_v16, %v540_v14 }
 0x11e   : > { %v723_v19 = vadd.f32 %v2042_v44, %v636_v15 }
 0x11f   : > { %v724_v20 = vadd.f32 %v2044_v46, %v685_v18 }
 0x120   : > { %v755_v22 = vmax.f32 %v723_v19, 0.0 }
 0x121   : > { %v756_v24 = vmax.f32 %v724_v20, 0.0 }
 0x122   : > { %v771_v25 = vpack.c.bf16 %v755_v22, %v753_v21 }
 0x123   : > { %v772_v26 = vpack.c.bf16 %v756_v24, %v754_v23 }
 0x124   : > { %1014 = vmatmul.bf16.gmra.mxu0 %v771_v25  ;;  %1112 = vmatmul.bf16.gmra.mxu2 %v771_v25 }
 0x125   : > { %1063 = vmatmul.bf16.gmra.mxu1 %v772_v26  ;;  %1161 = vmatmul.bf16.gmra.mxu3 %v772_v26 }
 0x131   : > { %v980_v29 = vpop.f32.mrf.mxu0 }
 0x132   : > { %v981_v44 = vadd.f32 %v980_v29, %v2081_v28  ;;  %v1029_v46 = vpop.f32.mrf.mxu1 }
 0x134   : > { %v2084_v30 = vadd.f32 %v1029_v46, %v981_v44 }
 0x137   : > { %v1078_v32 = vpop.f32.mrf.mxu2 }
 0x138   : > { %v1079_v33 = vadd.f32 %v1078_v32, %v2086_v31  ;;  %v1127_v34 = vpop.f32.mrf.mxu3 }
 0x139   : > { %v982_v35 = vpop.f32.mrf.mxu0 }
 0x13a   : > { %v2089_v36 = vadd.f32 %v1127_v34, %v1079_v33  ;;  %v983_v37 = vadd.f32 %v982_v35, %v2081_v28  ;;  %v1031_v38 = vpop.f32.mrf.mxu1 }
 0x13c   : > { %v2092_v39 = vadd.f32 %v1031_v38, %v983_v37 }
 0x13f   : > { %v1080_v40 = vpop.f32.mrf.mxu2 }
 0x140   : > { %v1081_v41 = vadd.f32 %v1080_v40, %v2086_v31  ;;  %v1129_v42 = vpop.f32.mrf.mxu3 }
 0x141   : > { %v985_v43 = vpop.f32.mrf.mxu0 }
 0x142   : > { %v2095_v45 = vadd.f32 %v1129_v42, %v1081_v41  ;;  %v986_v47 = vadd.f32 %v985_v43, %v2081_v28  ;;  %v1034_v48 = vpop.f32.mrf.mxu1 }
 0x144   : > { %v2098_v49 = vadd.f32 %v1034_v48, %v986_v47 }
 0x147   : > { %v1083_v50 = vpop.f32.mrf.mxu2 }
 0x148   : > { %v1084_v51 = vadd.f32 %v1083_v50, %v2086_v31  ;;  %v1132_v52 = vpop.f32.mrf.mxu3 }
 0x149   : > { %v987_v53 = vpop.f32.mrf.mxu0 }
 0x14a   : > { %v2101_v54 = vadd.f32 %v1132_v52, %v1084_v51  ;;  %v988_v55 = vadd.f32 %v987_v53, %v2081_v28  ;;  %v1036_v56 = vpop.f32.mrf.mxu1 }
 0x14c   : > { %v2104_v57 = vadd.f32 %v1036_v56, %v988_v55 }
 0x14f   : > { %v1085_v58 = vpop.f32.mrf.mxu2 }
 0x150   : > { %v1086_v59 = vadd.f32 %v1085_v58, %v2086_v31  ;;  %v1134_v60 = vpop.f32.mrf.mxu3 }
 0x151   : > { %v990_v61 = vpop.f32.mrf.mxu0 }
 0x152   : > { %v2107_v62 = vadd.f32 %v1134_v60, %v1086_v59  ;;  %v991_v63 = vadd.f32 %v990_v61, %v2081_v28  ;;  %v1039_v0 = vpop.f32.mrf.mxu1 }
 0x154   : > { %v2110_v1 = vadd.f32 %v1039_v0, %v991_v63 }
 0x157   : > { %v1088_v2 = vpop.f32.mrf.mxu2 }
 0x158   : > { %v1089_v3 = vadd.f32 %v1088_v2, %v2086_v31  ;;  %v1137_v4 = vpop.f32.mrf.mxu3 }
 0x159   : > { %v992_v5 = vpop.f32.mrf.mxu0 }
 0x15a   : > { %v2113_v6 = vadd.f32 %v1137_v4, %v1089_v3  ;;  %v993_v7 = vadd.f32 %v992_v5, %v2081_v28  ;;  %v1041_v8 = vpop.f32.mrf.mxu1 }
 0x15c   : > { %v2116_v9 = vadd.f32 %v1041_v8, %v993_v7 }
 0x15f   : > { %v1090_v10 = vpop.f32.mrf.mxu2 }
 0x160   : > { %v1091_v11 = vadd.f32 %v1090_v10, %v2086_v31  ;;  %v1139_v12 = vpop.f32.mrf.mxu3 }
 0x161   : > { %v995_v13 = vpop.f32.mrf.mxu0 }
 0x162   : > { %v2119_v14 = vadd.f32 %v1139_v12, %v1091_v11  ;;  %v996_v15 = vadd.f32 %v995_v13, %v2081_v28  ;;  %v1044_v16 = vpop.f32.mrf.mxu1 }
 0x164   : > { %v2122_v17 = vadd.f32 %v1044_v16, %v996_v15 }
 0x167   : > { %v1093_v18 = vpop.f32.mrf.mxu2 }
 0x168   : > { %v1094_v19 = vadd.f32 %v1093_v18, %v2086_v31  ;;  %v1142_v20 = vpop.f32.mrf.mxu3 }
 0x169   : > { %v997_v21 = vpop.f32.mrf.mxu0 }
 0x16a   : > { %v2125_v22 = vadd.f32 %v1142_v20, %v1094_v19  ;;  %v998_v23 = vadd.f32 %v997_v21, %v2081_v28  ;;  %v1046_v24 = vpop.f32.mrf.mxu1 }
 0x16c   : > { %v2128_v25 = vadd.f32 %v1046_v24, %v998_v23 }
 0x16f   : > { %v1095_v26 = vpop.f32.mrf.mxu2 }
 0x170   : > { %v1096_v27 = vadd.f32 %v1095_v26, %v2086_v31  ;;  %v1144_v29 = vpop.f32.mrf.mxu3 }
 0x171   : > { %v1000_v44 = vpop.f32.mrf.mxu0 }
 0x172   : > { %v2131_v46 = vadd.f32 %v1144_v29, %v1096_v27  ;;  %v1001_v32 = vadd.f32 %v1000_v44, %v2081_v28  ;;  %v1049_v33 = vpop.f32.mrf.mxu1 }
 0x174   : > { %v2134_v34 = vadd.f32 %v1049_v33, %v1001_v32 }
 0x177   : > { %v1098_v35 = vpop.f32.mrf.mxu2 }
 0x178   : > { %v1099_v37 = vadd.f32 %v1098_v35, %v2086_v31  ;;  %v1147_v38 = vpop.f32.mrf.mxu3 }
 0x179   : > { %v1002_v40 = vpop.f32.mrf.mxu0 }
 0x17a   : > { %v2137_v41 = vadd.f32 %v1147_v38, %v1099_v37  ;;  %v1003_v42 = vadd.f32 %v1002_v40, %v2081_v28  ;;  %v1051_v43 = vpop.f32.mrf.mxu1 }
 0x17c   : > { %v2140_v47 = vadd.f32 %v1051_v43, %v1003_v42 }
 0x17f   : > { %v1100_v48 = vpop.f32.mrf.mxu2 }
 0x180   : > { %v1101_v50 = vadd.f32 %v1100_v48, %v2086_v31  ;;  %v1149_v51 = vpop.f32.mrf.mxu3 }
 0x181   : > { %v1005_v52 = vpop.f32.mrf.mxu0 }
 0x182   : > { %v2143_v53 = vadd.f32 %v1149_v51, %v1101_v50  ;;  %v1054_v55 = vpop.f32.mrf.mxu1 }
 0x187   : > { %v1103_v56 = vpop.f32.mrf.mxu2 }
 0x188   : > { %v2145_v58 = vpop.f32.mrf.mxu3 }
 0x189   : > { %v1007_v59 = vpop.f32.mrf.mxu0 }
 0x18a   : > { %v1056_v60 = vpop.f32.mrf.mxu1  ;;  %v1008_v48 = vadd.f32 %v1007_v59, %v2081_v28 }
 0x18f   : > { %v1105_v61 = vpop.f32.mrf.mxu2 }
 0x190   : > { %v1154_v63 = vpop.f32.mrf.mxu3 }
 0x191   : > { %v1010_v0 = vpop.f32.mrf.mxu0 }
 0x192   : > { %v1059_v2 = vpop.f32.mrf.mxu1  ;;  %v1011_v33 = vadd.f32 %v1010_v0, %v2081_v28  ;;  %v1006_v0 = vadd.f32 %v1005_v52, %v2081_v28 }
 0x194   : > { %v1060_v50 = vadd.f32 %v1059_v2, %v1011_v33  ;;  %v1104_v2 = vadd.f32 %v1103_v56, %v2086_v31  ;;  %v1184_v56 = vmax.f32 %v2137_v41, 0.0  ;;  %v1175_v41 = vmax.f32 %v2110_v1, 0.0 }
 0x195   : > { %v1172_v1 = vmax.f32 %v2101_v54, 0.0 }
 0x197   : > { %v1108_v3 = vpop.f32.mrf.mxu2 }
 0x198   : > { %v1157_v4 = vpop.f32.mrf.mxu3 }
 0x199   : > { %v1012_v5 = vpop.f32.mrf.mxu0 }
 0x19a   : > { %v1061_v7 = vpop.f32.mrf.mxu1  ;;  %v1013_v23 = vadd.f32 %v1012_v5, %v2081_v28  ;;  %v1109_v5 = vadd.f32 %v1108_v3, %v2086_v31 }
 0x19c   : > { %v1062_v35 = vadd.f32 %v1061_v7, %v1013_v23  ;;  %v1057_v7 = vadd.f32 %v1056_v60, %v1008_v48  ;;  %v1185_v60 = vmax.f32 %v2140_v47, 0.0  ;;  %v1182_v47 = vmax.f32 %v2131_v46, 0.0 }
 0x19d   : > { %v1173_v46 = vmax.f32 %v2104_v57, 0.0  ;;  %v1167_v57 = vmax.f32 %v2084_v30, 0.0 }
 0x19e   : > { %v1193_v51 = vmax.f32 %v1062_v35, 0.0  ;;  %v1189_v59 = vmax.f32 %v1057_v7, 0.0 }
 0x19f   : > { %v1110_v8 = vpop.f32.mrf.mxu2 }
 0x1a0   : > { %v1159_v10 = vpop.f32.mrf.mxu3  ;;  %v1111_v40 = vadd.f32 %v1110_v8, %v2086_v31  ;;  %v1106_v8 = vadd.f32 %v1105_v61, %v2086_v31 }
 0x1a1   : > { %v1015_v11 = vpop.f32.mrf.mxu0 }
 0x1a2   : > { %v1064_v12 = vpop.f32.mrf.mxu1  ;;  %v1016_v18 = vadd.f32 %v1015_v11, %v2081_v28  ;;  %v1160_v11 = vadd.f32 %v1159_v10, %v1111_v40 }
 0x1a4   : > { %v1065_v24 = vadd.f32 %v1064_v12, %v1016_v18  ;;  %v1055_v18 = vadd.f32 %v1054_v55, %v1006_v0  ;;  %v1183_v55 = vmax.f32 %v2134_v34, 0.0  ;;  %v1201_v34 = vld [vmem:[%s2229_s8] sm:$0xff] }
 0x1a6   : > { %v1195_v37 = vmax.f32 %v1065_v24, 0.0  ;;  %v1187_v10 = vmax.f32 %v1055_v18, 0.0 }
 0x1a7   : > { %v1113_v13 = vpop.f32.mrf.mxu2 }
 0x1a8   : > { %v1162_v15 = vpop.f32.mrf.mxu3  ;;  %v1114_v29 = vadd.f32 %v1113_v13, %v2086_v31  ;;  %v1191_v13 = vmax.f32 %v1060_v50, 0.0 }
 0x1a9   : > { %v1017_v16 = vpop.f32.mrf.mxu0 }
 0x1aa   : > { %v1018_v19 = vadd.f32 %v1017_v16, %v2081_v28  ;;  %v1066_v20 = vpop.f32.mrf.mxu1  ;;  %v1163_v42 = vadd.f32 %v1162_v15, %v1114_v29  ;;  %v1158_v15 = vadd.f32 %v1157_v4, %v1109_v5  ;;  %v1194_v16 = vmax.f32 %v1160_v11, 0.0 }
 0x1ab   : > { %v1153_v28 = vadd.f32 %v2145_v58, %v1104_v2  ;;  %v1186_v4 = vmax.f32 %v2143_v53, 0.0  ;;  %v1179_v58 = vmax.f32 %v2122_v17, 0.0  ;;  %v1655_v53 = vmov 0  }
 0x1ac   : > { %v1067_v21 = vadd.f32 %v1066_v20, %v1018_v19  ;;  %v1196_v12 = vmax.f32 %v1163_v42, 0.0  ;;  %v1155_v19 = vadd.f32 %v1154_v63, %v1106_v8  ;;  %v1192_v3 = vmax.f32 %v1158_v15, 0.0  ;;  %1590 = vset.pattern.permute.xlu0 %v1655_v53 }
 0x1ad   : > { %v1188_v61 = vmax.f32 %v1153_v28, 0.0  ;;  %v1177_v63 = vmax.f32 %v2116_v9, 0.0  ;;  %1204 = vperm.xlu0 %1590, %v1201_v34   ;;  %v1178_v17 = vmax.f32 %v2119_v14, 0.0  ;;  %v1176_v20 = vmax.f32 %v2113_v6, 0.0 }
 0x1ae   : > { %v1197_v26 = vmax.f32 %v1067_v21, 0.0  ;;  %v1190_v52 = vmax.f32 %v1155_v19, 0.0  ;;  %v1171_v9 = vmax.f32 %v2098_v49, 0.0  ;;  %v1174_v21 = vmax.f32 %v2107_v62, 0.0  ;;  %v1199_v49 = vld [vmem:[%s2228_s7] sm:$0xff] }
 0x1af   : > { %v1115_v27 = vpop.f32.mrf.mxu2  ;;  %v1170_v6 = vmax.f32 %v2095_v45, 0.0  ;;  %v1168_v62 = vmax.f32 %v2089_v36, 0.0 }
 0x1b0   : > { %v1116_v44 = vadd.f32 %v1115_v27, %v2086_v31  ;;  %1207 = vmatpush.xpose.msra.mxu0 %v1197_v26  ;;  %v1164_v32 = vpop.f32.mrf.mxu3  ;;  %v1181_v31 = vmax.f32 %v2128_v25, 0.0  ;;  %v1180_v25 = vmax.f32 %v2125_v22, 0.0  ;;  %v1169_v22 = vmax.f32 %v2092_v39, 0.0  ;;  %v1200_v39 = vld [vmem:[%s2228_s7 + $0x8] sm:$0xff] }
 0x1b2   : > { %v1165_v38 = vadd.f32 %v1164_v32, %v1116_v44 }
 0x1b4   : > { %v1198_v43 = vmax.f32 %v1165_v38, 0.0  ;;  %1208 = vmatpush.xpose.msra.mxu0 %v1195_v37 }
 0x1b6   : > { %1227 = vmatpush.xpose.msra.mxu1 %v1198_v43 }
 0x1b8   : > { %1209 = vmatpush.xpose.msra.mxu0 %v1193_v51 }
 0x1ba   : > { %1228 = vmatpush.xpose.msra.mxu1 %v1196_v12 }
 0x1bc   : > { %1210 = vmatpush.xpose.msra.mxu0 %v1191_v13 }
 0x1be   : > { %1229 = vmatpush.xpose.msra.mxu1 %v1194_v16 }
 0x1c0   : > { %1211 = vmatpush.xpose.msra.mxu0 %v1189_v59 }
 0x1c2   : > { %1230 = vmatpush.xpose.msra.mxu1 %v1192_v3 }
 0x1c4   : > { %1212 = vmatpush.xpose.msra.mxu0 %v1187_v10 }
 0x1c6   : > { %1231 = vmatpush.xpose.msra.mxu1 %v1190_v52 }
 0x1c8   : > { %1213 = vmatpush.xpose.msra.mxu0 %v1185_v60 }
 0x1ca   : > { %1232 = vmatpush.xpose.msra.mxu1 %v1188_v61 }
 0x1cc   : > { %1214 = vmatpush.xpose.msra.mxu0 %v1183_v55 }
 0x1ce   : > { %1233 = vmatpush.xpose.msra.mxu1 %v1186_v4 }
 0x1d0   : > { %1215 = vmatpush.xpose.msra.mxu0 %v1181_v31 }
 0x1d2   : > { %1234 = vmatpush.xpose.msra.mxu1 %v1184_v56 }
 0x1d4   : > { %1216 = vmatpush.xpose.msra.mxu0 %v1179_v58 }
 0x1d6   : > { %1235 = vmatpush.xpose.msra.mxu1 %v1182_v47 }
 0x1d8   : > { %1217 = vmatpush.xpose.msra.mxu0 %v1177_v63 }
 0x1da   : > { %1236 = vmatpush.xpose.msra.mxu1 %v1180_v25 }
 0x1dc   : > { %1218 = vmatpush.xpose.msra.mxu0 %v1175_v41 }
 0x1de   : > { %1237 = vmatpush.xpose.msra.mxu1 %v1178_v17 }
 0x1e0   : > { %1219 = vmatpush.xpose.msra.mxu0 %v1173_v46 }
 0x1e2   : > { %1238 = vmatpush.xpose.msra.mxu1 %v1176_v20 }
 0x1e4   : > { %1220 = vmatpush.xpose.msra.mxu0 %v1171_v9 }
 0x1e6   : > { %1239 = vmatpush.xpose.msra.mxu1 %v1174_v21 }
 0x1e8   : > { %1221 = vmatpush.xpose.msra.mxu0 %v1169_v22 }
 0x1ea   : > { %1240 = vmatpush.xpose.msra.mxu1 %v1172_v1 }
 0x1ec   : > { %1222 = vmatpush.xpose.msra.mxu0 %v1167_v57 }
 0x1ee   : > { %1241 = vmatpush.xpose.msra.mxu1 %v1170_v6 }
 0x1ef   : > { %1223 = vmatmul.f32.vlgmr.msra.gmra.mxu0 %v1199_v49 }
 0x1f2   : > { %1242 = vmatpush.xpose.msra.mxu1 %v1168_v62 }
 0x1f5   : > { %1243 = vmatmul.f32.vlgmr.msra.gmra.mxu1 %v1200_v39 }
 0x21f   : > { %v1205_v30 = vpop.permute.xlu0 %1204 }
 0x26c   : > { %v1224_v45 = vpop.f32.mrf.mxu0 }
 0x26d   : > { %v1225_v54 = vadd.f32 %v1224_v45, %v1205_v30 }
 0x272   : > { %v1244_v36 = vpop.f32.mrf.mxu1 }
 0x273   : > { %v1245_v14 = vadd.f32 %v1244_v36, %v1225_v54 }
 0x275   : > { %1247 = vst [vmem:[%s342_s26] sm:$0xff] %v1245_v14 }
 0x276   : > { %1618 = shalt.err (!%p1615_p3)
}
 0x277   : > { %1550 = dma.vmem_to_hbm [thread:$0]  (%p1744_p5), %s1262_s21, 128, %s1264_s22, %s1249_s23  }
 0x278 PF: > { %p1556_p4 = scmp.ge.s32.totalorder %s1653_s12, 2  ;;  %s1275_s27 = sand.u32 1, %s1641_s30  }
 0x279   : > { %s1276_s17 = scalar_lea.sflag [#allocation3], %s1275_s27 }
 0x27a   : > { %p1553_p7 = pnand %p1556_p4, %p1748_p6 }
 0x27c   : > { %p1554_p8 = pneg %p1553_p7 }
 0x27e   : > { %1636 = dma.done.wait (%p1554_p8), %s1276_s17, 128  }
 0x27f   : > { %1638 = vsyncadd (%p1554_p8), %s1276_s17, 4294967168  ;;  %p19_p9 = scmp.ge.s32.totalorder %s1731_s15, 4   ;;  %s2233_s30 = smov %s1645_s10 }
 0x280   : > { %s2234_s10 = smov %s1649_s11  ;;  %s2235_s11 = smov %s1742_s18 }
 0x281   : > { %s2236_s12 = smov %s1731_s15  ;;  %21 = sbr.rel (!%p19_p9) target bundleno = 3 (0x3), region = 94 }
 0x286   :  { %1282 = vsyncpa [#allocation3], 1 }
 0x287   :  { %1284 = vsyncpa [#allocation3 + $0x1], 1 }

</bundles_post_ra>
